<compile_context>
chip_gen: v5e
topology: v5e:2x2
jax: 0.10.0
libtpu: 0.0.40
codegen_flags: <defaults>
</compile_context>

<pallas_src>
import functools

import jax
import jax.numpy as jnp
from jax import lax
from jax.experimental import pallas as pl
from jax.experimental.pallas import tpu as pltpu

EPS = 1e-5


def _encoder_kernel(x_ref, w_ref, b_ref, gamma_ref, beta_ref, o_ref, *, tk):
    # grid = (E tiles, K tiles); K (reduction over D_in) is the innermost axis.
    k = pl.program_id(1)

    @pl.when(k == 0)
    def _():
        o_ref[...] = jnp.zeros_like(o_ref)

    # x is fully VMEM-resident (constant block index); slice the K chunk here.
    x_blk = x_ref[:, pl.ds(pl.multiple_of(k * tk, 128), tk)]        # (B, tk) bf16
    # W tile: (TE, tk) bf16 in its native (E, D_in) layout; contract dim 1 vs dim 1.
    # Accumulate in f32 directly into the (resident) output block.
    o_ref[...] += lax.dot_general(
        x_blk, w_ref[...],
        dimension_numbers=(((1,), (1,)), ((), ())),
        preferred_element_type=jnp.float32,
    )

    @pl.when(k == pl.num_programs(1) - 1)
    def _():
        y = o_ref[...] + b_ref[...]                                 # (B, TE) f32
        # BatchNorm1d (training mode): per-feature stats over the batch axis,
        # biased variance. Columns are independent, so per-E-tile stats are exact
        # and zero-padded columns cannot affect real ones.
        mean = jnp.mean(y, axis=0, keepdims=True)                   # (1, TE)
        centered = y - mean
        var = jnp.mean(centered * centered, axis=0, keepdims=True)  # biased
        inv_std = lax.rsqrt(var + EPS)
        # Fused affine epilogue: o = y * scale + shift
        scale = gamma_ref[...] * inv_std                            # (1, TE)
        shift = beta_ref[...] - mean * scale                        # (1, TE)
        o_ref[...] = (y * scale + shift).astype(o_ref.dtype)


def _fit_tile(extent, target, multiple=128):
    """Largest multiple of `multiple` that divides `extent` and is <= max(target, multiple).
    `extent` must itself be a multiple of `multiple`."""
    t = min(target, extent)
    t -= t % multiple
    t = max(t, multiple)
    while extent % t != 0:
        t -= multiple
    return t


def encoder_cnn_saved_forward(features_nchw, w, b, gamma, beta, *, tk=None, te=None):
    """features_nchw: (B, C, H, W); w: (E, D_in) [native PyTorch layout];
    b/gamma/beta: (E,).  Returns (B, E) float32 (training-mode BatchNorm output)."""
    B = features_nchw.shape[0]
    x = features_nchw.reshape(B, -1).astype(jnp.bfloat16)           # (B, D_in)
    d_in = x.shape[1]
    E = w.shape[0]

    w_bf = w.astype(jnp.bfloat16)                                   # native (E, D_in)

    # Pad D_in and E up to multiples of 128 so every tile is lane-dense
    # (unmasked vst on the output path) and satisfies the (8,128) tiling rule.
    d_pad = (-d_in) % 128
    e_pad = (-E) % 128
    if d_pad:
        x = jnp.pad(x, ((0, 0), (0, d_pad)))
        w_bf = jnp.pad(w_bf, ((0, 0), (0, d_pad)))
    if e_pad:
        w_bf = jnp.pad(w_bf, ((0, e_pad), (0, 0)))
    D = d_in + d_pad
    Ep = E + e_pad

    b2 = jnp.pad(b.astype(jnp.float32), (0, e_pad)).reshape(1, Ep)
    g2 = jnp.pad(gamma.astype(jnp.float32), (0, e_pad)).reshape(1, Ep)
    be2 = jnp.pad(beta.astype(jnp.float32), (0, e_pad)).reshape(1, Ep)

    # ---- Tile selection -----------------------------------------------------
    # With small B the kernel is weight-streaming / grid-overhead bound, so we
    # want few, large grid steps: single K step up to tk=2048 and ~1-2 MiB
    # weight tiles (te<=512), all multiples of 128.
    tk = _fit_tile(D, 2048 if tk is None else tk)
    te = _fit_tile(Ep, 512 if te is None else te)
    # Keep >=2 E tiles when possible so the "parallel" E axis can span both
    # TensorCores on multi-core chips (v7x).
    if Ep // te < 2 and Ep >= 256:
        te = _fit_tile(Ep, Ep // 2)

    # Conservative VMEM budget (fits v5e's 16 MiB scoped default with headroom):
    # resident x + up-to-3-deep W stream + double-buffered output tile + params.
    def vmem_bytes(te_, tk_):
        return B * D * 2 + 3 * te_ * tk_ * 2 + 2 * B * te_ * 4 + 6 * te_ * 4

    VMEM_BUDGET = 12 * 1024 * 1024
    while vmem_bytes(te, tk) > VMEM_BUDGET and tk > 128:
        tk = _fit_tile(D, tk // 2)
    while vmem_bytes(te, tk) > VMEM_BUDGET and te > 128:
        te = _fit_tile(Ep, te // 2)

    n_e = Ep // te
    n_k = D // tk

    # Deeper weight pipeline only when there are enough tiles to fill it.
    if n_e * n_k >= 3:
        w_spec = pl.BlockSpec((te, tk), lambda j, k: (j, k),
                              pipeline_mode=pl.Buffered(3))
    else:
        w_spec = pl.BlockSpec((te, tk), lambda j, k: (j, k))

    cost = pl.CostEstimate(
        flops=2 * B * D * Ep,
        transcendentals=Ep,                      # rsqrt per feature
        bytes_accessed=x.size * 2 + w_bf.size * 2 + 3 * Ep * 4 + B * Ep * 4,
    )

    out = pl.pallas_call(
        functools.partial(_encoder_kernel, tk=tk),
        out_shape=jax.ShapeDtypeStruct((B, Ep), jnp.float32),
        grid_spec=pltpu.PrefetchScalarGridSpec(
            num_scalar_prefetch=0,
            grid=(n_e, n_k),
            in_specs=[
                pl.BlockSpec((B, D), lambda j, k: (0, 0)),     # x: fully VMEM-resident
                w_spec,                                        # W: streamed, (E, D_in)
                pl.BlockSpec((1, te), lambda j, k: (0, j)),    # bias
                pl.BlockSpec((1, te), lambda j, k: (0, j)),    # gamma
                pl.BlockSpec((1, te), lambda j, k: (0, j)),    # beta
            ],
            out_specs=pl.BlockSpec((B, te), lambda j, k: (0, j)),
        ),
        compiler_params=pltpu.CompilerParams(
            dimension_semantics=("parallel", "arbitrary"),
        ),
        cost_estimate=cost,
    )(x, w_bf, b2, g2, be2)

    return out[:, :E] if e_pad else out


def _reference_bf16(features, w, b, gamma, beta):
    """Reference matching the kernel's precision contract (bf16 matmul inputs,
    f32 accumulation, f32 BN)."""
    x = features.reshape(features.shape[0], -1)
    y = jnp.dot(x.astype(jnp.bfloat16), w.astype(jnp.bfloat16).T,
                preferred_element_type=jnp.float32) + b
    mean = jnp.mean(y, axis=0, keepdims=True)
    var = jnp.mean((y - mean) ** 2, axis=0, keepdims=True)
    return (y - mean) * lax.rsqrt(var + EPS) * gamma + beta


def _reference_f32(features, w, b, gamma, beta):
    x = features.reshape(features.shape[0], -1)
    y = x @ w.T + b
    mean = jnp.mean(y, axis=0, keepdims=True)
    var = jnp.mean((y - mean) ** 2, axis=0, keepdims=True)
    return (y - mean) * lax.rsqrt(var + EPS) * gamma + beta


if __name__ == "__main__":
    key = jax.random.PRNGKey(0)
    k1, k2, k3, k4 = jax.random.split(key, 4)

    # --- Test 1: B=8, C=4, H=W=8 -> resnet_out_size = 256, embed_size = 256 ---
    B, C, H, W = 8, 4, 8, 8
    resnet_out_size = C * H * W
    embed_size = 256

    features = jax.random.normal(k1, (B, C, H, W), dtype=jnp.float32)
    # init_weights(): linear.weight ~ N(0, 0.02), linear.bias = 0; BN gamma=1, beta=0.
    w = 0.02 * jax.random.normal(k2, (embed_size, resnet_out_size), dtype=jnp.float32)
    b = jnp.zeros((embed_size,), jnp.float32)
    gamma = jnp.ones((embed_size,), jnp.float32)
    beta = jnp.zeros((embed_size,), jnp.float32)

    # Default tiles: single K step, two E tiles (exercises the "parallel" E axis).
    out = jax.block_until_ready(encoder_cnn_saved_forward(features, w, b, gamma, beta))
    assert out.shape == (B, embed_size)
    ref_bf16 = _reference_bf16(features, w, b, gamma, beta)
    assert jnp.allclose(out, ref_bf16, atol=1e-3, rtol=1e-3), "mismatch vs bf16 reference"
    ref_f32 = _reference_f32(features, w, b, gamma, beta)
    assert jnp.allclose(out, ref_f32, atol=5e-2, rtol=5e-2), "mismatch vs f32 reference"

    # Forced small tiles: exercises K-accumulation into o_ref and the Buffered(3) W stream.
    out2 = jax.block_until_ready(
        encoder_cnn_saved_forward(features, w, b, gamma, beta, tk=128, te=128))
    assert jnp.allclose(out2, ref_bf16, atol=1e-3, rtol=1e-3), "mismatch (tiled path)"

    # --- Test 2: awkward shapes (D_in=243, embed=200) -> exercises 128-padding ---
    B2, C2, H2, W2 = 8, 3, 9, 9
    E2 = 200
    feats2 = jax.random.normal(k3, (B2, C2, H2, W2), dtype=jnp.float32)
    w2 = 0.02 * jax.random.normal(k4, (E2, C2 * H2 * W2), dtype=jnp.float32)
    b_2 = jnp.zeros((E2,), jnp.float32)
    g_2 = jnp.ones((E2,), jnp.float32)
    be_2 = jnp.zeros((E2,), jnp.float32)
    out3 = jax.block_until_ready(encoder_cnn_saved_forward(feats2, w2, b_2, g_2, be_2))
    assert out3.shape == (B2, E2)
    ref3 = _reference_bf16(feats2, w2, b_2, g_2, be_2)
    assert jnp.allclose(out3, ref3, atol=1e-3, rtol=1e-3), "mismatch (padded path)"

    print("KERNEL_OK")
</pallas_src>

<mosaic_0001>
module attributes {stable_mosaic.version = 11 : i64} {
  func.func @_encoder_kernel(%arg0: i32, %arg1: i32, %arg2: memref<8x256xbf16, #tpu.memory_space<vmem>>, %arg3: memref<128x256xbf16, #tpu.memory_space<vmem>>, %arg4: memref<1x128xf32, #tpu.memory_space<vmem>>, %arg5: memref<1x128xf32, #tpu.memory_space<vmem>>, %arg6: memref<1x128xf32, #tpu.memory_space<vmem>>, %arg7: memref<8x128xf32, #tpu.memory_space<vmem>>) attributes {dimension_semantics = [#tpu.dimension_semantics<parallel>, #tpu.dimension_semantics<arbitrary>], iteration_bounds = array<i64: 2, 1>, scalar_prefetch = 0 : i64, scratch_operands = 0 : i64, tpu.core_type = #tpu.core_type<tc>, window_params = [{pipeline_mode = #tpu.pipeline_mode<synchronous>, transform_indices = @transform_0, window_bounds = array<i64: 8, 256>}, {transform_indices = @transform_1, window_bounds = array<i64: 128, 256>}, {transform_indices = @transform_2, window_bounds = array<i64: 1, 128>}, {transform_indices = @transform_3, window_bounds = array<i64: 1, 128>}, {transform_indices = @transform_4, window_bounds = array<i64: 1, 128>}, {transform_indices = @transform_5, window_bounds = array<i64: 8, 128>}]} {
    %c0_i32 = arith.constant 0 : i32
    %0 = arith.cmpi eq, %arg1, %c0_i32 : i32
    %1 = arith.extui %0 : i1 to i32
    %c0_i32_0 = arith.constant 0 : i32
    %2 = arith.cmpi ne, %1, %c0_i32_0 : i32
    scf.if %2 {
      %cst_9 = arith.constant 0.000000e+00 : f32
      %15 = vector.broadcast %cst_9 : f32 to vector<8x128xf32>
      %c0_10 = arith.constant 0 : index
      %c0_11 = arith.constant 0 : index
      %16 = vector.load %arg7[%c0_10, %c0_11] : memref<8x128xf32, #tpu.memory_space<vmem>>, vector<8x128xf32>
      tpu.vector_store %arg7[%c0_10, %c0_11], %15 {strides = array<i32>} : memref<8x128xf32, #tpu.memory_space<vmem>>, vector<8x128xf32>,
    } else {
    }
    %c256_i32 = arith.constant 256 : i32
    %3 = arith.muli %arg1, %c256_i32 : i32
    %4 = tpu.assume_multiple %3, 128 : i32
    %c0 = arith.constant 0 : index
    %5 = arith.index_cast %4 : i32 to index
    %6 = vector.load %arg2[%c0, %5] : memref<8x256xbf16, #tpu.memory_space<vmem>>, vector<8x256xbf16>
    %c0_1 = arith.constant 0 : index
    %c0_2 = arith.constant 0 : index
    %7 = vector.load %arg7[%c0_1, %c0_2] : memref<8x128xf32, #tpu.memory_space<vmem>>, vector<8x128xf32>
    %c0_3 = arith.constant 0 : index
    %c0_4 = arith.constant 0 : index
    %8 = vector.load %arg3[%c0_3, %c0_4] : memref<128x256xbf16, #tpu.memory_space<vmem>>, vector<128x256xbf16>
    %cst = arith.constant dense<0.000000e+00> : vector<8x128xf32>
    %9 = tpu.matmul %6, %8, %cst {dimension_numbers = #tpu.dot_dimension_numbers<[1], [1], [0], [0], [0, 0, 1, 0], [], []>} : vector<8x256xbf16>, vector<128x256xbf16>, vector<8x128xf32> -> vector<8x128xf32>
    %10 = arith.addf %7, %9 : vector<8x128xf32>
    %c0_5 = arith.constant 0 : index
    %c0_6 = arith.constant 0 : index
    %11 = vector.load %arg7[%c0_5, %c0_6] : memref<8x128xf32, #tpu.memory_space<vmem>>, vector<8x128xf32>
    tpu.vector_store %arg7[%c0_5, %c0_6], %10 {strides = array<i32>} : memref<8x128xf32, #tpu.memory_space<vmem>>, vector<8x128xf32>,
    %c0_i32_7 = arith.constant 0 : i32
    %12 = arith.cmpi eq, %arg1, %c0_i32_7 : i32
    %13 = arith.extui %12 : i1 to i32
    %c0_i32_8 = arith.constant 0 : i32
    %14 = arith.cmpi ne, %13, %c0_i32_8 : i32
    scf.if %14 {
      %c0_9 = arith.constant 0 : index
      %c0_10 = arith.constant 0 : index
      %15 = vector.load %arg7[%c0_9, %c0_10] : memref<8x128xf32, #tpu.memory_space<vmem>>, vector<8x128xf32>
      %c0_11 = arith.constant 0 : index
      %c0_12 = arith.constant 0 : index
      %16 = vector.load %arg4[%c0_11, %c0_12] : memref<1x128xf32, #tpu.memory_space<vmem>>, vector<1x128xf32>
      %17 = vector.broadcast %16 : vector<1x128xf32> to vector<8x128xf32>
      %18 = arith.addf %15, %17 : vector<8x128xf32>
      %cst_13 = arith.constant dense<0.000000e+00> : vector<128xf32>
      %19 = vector.multi_reduction <add>, %18, %cst_13 [0] : vector<8x128xf32> to vector<128xf32>
      %20 = vector.shape_cast %19 : vector<128xf32> to vector<1x128xf32>
      %cst_14 = arith.constant 8.000000e+00 : f32
      %21 = vector.broadcast %cst_14 : f32 to vector<1x128xf32>
      %22 = arith.divf %20, %21 : vector<1x128xf32>
      %23 = vector.broadcast %22 : vector<1x128xf32> to vector<8x128xf32>
      %24 = arith.subf %18, %23 : vector<8x128xf32>
      %25 = arith.mulf %24, %24 : vector<8x128xf32>
      %cst_15 = arith.constant dense<0.000000e+00> : vector<128xf32>
      %26 = vector.multi_reduction <add>, %25, %cst_15 [0] : vector<8x128xf32> to vector<128xf32>
      %27 = vector.shape_cast %26 : vector<128xf32> to vector<1x128xf32>
      %cst_16 = arith.constant 8.000000e+00 : f32
      %28 = vector.broadcast %cst_16 : f32 to vector<1x128xf32>
      %29 = arith.divf %27, %28 : vector<1x128xf32>
      %cst_17 = arith.constant 9.99999974E-6 : f32
      %30 = vector.broadcast %cst_17 : f32 to vector<1x128xf32>
      %31 = arith.addf %29, %30 : vector<1x128xf32>
      %32 = math.rsqrt %31 : vector<1x128xf32>
      %c0_18 = arith.constant 0 : index
      %c0_19 = arith.constant 0 : index
      %33 = vector.load %arg5[%c0_18, %c0_19] : memref<1x128xf32, #tpu.memory_space<vmem>>, vector<1x128xf32>
      %34 = arith.mulf %33, %32 : vector<1x128xf32>
      %c0_20 = arith.constant 0 : index
      %c0_21 = arith.constant 0 : index
      %35 = vector.load %arg6[%c0_20, %c0_21] : memref<1x128xf32, #tpu.memory_space<vmem>>, vector<1x128xf32>
      %36 = arith.mulf %22, %34 : vector<1x128xf32>
      %37 = arith.subf %35, %36 : vector<1x128xf32>
      %38 = vector.broadcast %34 : vector<1x128xf32> to vector<8x128xf32>
      %39 = arith.mulf %18, %38 : vector<8x128xf32>
      %40 = vector.broadcast %37 : vector<1x128xf32> to vector<8x128xf32>
      %41 = arith.addf %39, %40 : vector<8x128xf32>
      %c0_22 = arith.constant 0 : index
      %c0_23 = arith.constant 0 : index
      %42 = vector.load %arg7[%c0_22, %c0_23] : memref<8x128xf32, #tpu.memory_space<vmem>>, vector<8x128xf32>
      tpu.vector_store %arg7[%c0_22, %c0_23], %41 {strides = array<i32>} : memref<8x128xf32, #tpu.memory_space<vmem>>, vector<8x128xf32>,
    } else {
    }
    return
  }
  func.func @transform_0(%arg0: i32, %arg1: i32) -> (i32, i32) {
    %c0_i32 = arith.constant 0 : i32
    %c0_i32_0 = arith.constant 0 : i32
    %c0_i32_1 = arith.constant 0 : i32
    return %c0_i32, %c0_i32_0 : i32, i32
  }
  func.func @transform_1(%arg0: i32, %arg1: i32) -> (i32, i32) {
    %c0_i32 = arith.constant 0 : i32
    return %arg0, %arg1 : i32, i32
  }
  func.func @transform_2(%arg0: i32, %arg1: i32) -> (i32, i32) {
    %c0_i32 = arith.constant 0 : i32
    %c0_i32_0 = arith.constant 0 : i32
    return %c0_i32, %arg0 : i32, i32
  }
  func.func @transform_3(%arg0: i32, %arg1: i32) -> (i32, i32) {
    %c0_i32 = arith.constant 0 : i32
    %c0_i32_0 = arith.constant 0 : i32
    return %c0_i32, %arg0 : i32, i32
  }
  func.func @transform_4(%arg0: i32, %arg1: i32) -> (i32, i32) {
    %c0_i32 = arith.constant 0 : i32
    %c0_i32_0 = arith.constant 0 : i32
    return %c0_i32, %arg0 : i32, i32
  }
  func.func @transform_5(%arg0: i32, %arg1: i32) -> (i32, i32) {
    %c0_i32 = arith.constant 0 : i32
    %c0_i32_0 = arith.constant 0 : i32
    return %c0_i32, %arg0 : i32, i32
  }
}

</mosaic_0001>

<bundles_post_ra>
// kernel: tpu_custom_call.1
= control target key start
LH: loop header
LB: loop body
LE: loop exit
PB: predicated region body
PF: predicated region fallthrough
CT: control target
= control target key end

     0   :  { %s1383_s0 = inlined_call_operand.hbm [shape: bf16[8,256], index: 0, kind: input, shape index: {}]   ;;  %s1384_s1 = inlined_call_operand.hbm [shape: bf16[256,256], index: 1, kind: input, shape index: {}]   ;;  %s1385_s2 = inlined_call_operand.hbm [shape: f32[1,256], index: 2, kind: input, shape index: {}]   ;;  %s1386_s3 = inlined_call_operand.vmem [shape: f32[1,256], index: 3, kind: input, shape index: {}]   ;;  %s1387_s4 = inlined_call_operand.hbm [shape: f32[1,256], index: 4, kind: input, shape index: {}]   ;;  %s1388_s5 = inlined_call_operand.hbm [shape: f32[8,256], index: 5, kind: output, shape index: {}]  }
   0x1   :  { %1390 = sst [smem:[#allocation17_spill]] %s1383_s0 }
   0x2   :  { %1391 = sst [smem:[#allocation18_spill]] %s1384_s1 }
   0x3   :  { %10 = vsyncpa [#allocation3], 0 }
   0x4   :  { %11 = vsyncpa [#allocation6], 0 }
   0x5   :  { %13 = vsyncpa [#allocation6 + $0x1], 0 }
   0x6   :  { %14 = vsyncpa [#allocation9], 0 }
   0x7   :  { %16 = vsyncpa [#allocation9 + $0x1], 0 }
   0x8   :  { %17 = vsyncpa [#allocation4], 0 }
   0x9   :  { %19 = vsyncpa [#allocation4 + $0x1], 0  ;;  %s1152_s18 = smov 0   ;;  %s1154_s19 = smov 0  }
   0xa   :  { %s1156_s20 = smov 0   ;;  %s1158_s21 = smov 0  }
   0xb   :  { %s1160_s22 = smov 0   ;;  %s1162_s23 = smov 0  }
   0xc LB: > { %s37_s24 = sadd.s32 1, %s1112_s22  ;;  %s67_s25 = sadd.s32 1, %s1104_s20  ;;  %s1116_s23 = sphi %s1162_s23, %s25_s23   ;;  %s1112_s22 = sphi %s1160_s22, %s1408_s22   ;;  %s1108_s21 = sphi %s1158_s21, %s1407_s21   ;;  %s1104_s20 = sphi %s1156_s20, %s1406_s20   ;;  %s1100_s19 = sphi %s1154_s19, %s1405_s19   ;;  %s1096_s18 = sphi %s1152_s18, %s1404_s18  }
   0xd   : > { %p39_p0 = scmp.ge.s32.totalorder %s37_s24, 2  ;;  %p74_p1 = scmp.ne.s32.totalorder %s1104_s20, %s1100_s19 }
   0xe   : > { %p75_p2 = scmp.eq.s32.totalorder %s1116_s23, 0  ;;  %p719_p3 = scmp.ge.s32.totalorder %s1116_s23, 2 }
   0xf   : > { %s1410_s24 = smov (%p39_p0, %s37_s24), 0  ;;  %p845_p5 = scmp.lt.s32.totalorder %s1116_s23, 2 }
  0x10   : > { %1392 = sst [smem:[#allocation15_spill]] %s1410_s24  ;;  %p1193_p4 = por %p75_p2, %p74_p1 }
  0x11   : > { %s62_s27 = ssub.s32 %s1112_s22, %s1410_s24  ;;  %s220_s28 = sand.u32 1, %s1116_s23  }
  0x12   : > { %p65_p6 = scmp.eq.s32.totalorder %s62_s27, 0  ;;  %s1202_s29 = sand.u32 1, %s1104_s20  }
  0x13   : > { %s797_s30 = sshll.u32 %s1112_s22, 7  ;;  %s720_s7 = sshll.u32 %s1202_s29, 7 }
  0x14   : > { %s1206_s6 = scalar_select %p65_p6, %s1104_s20, %s67_s25  }
  0x15   : > { %s1395_s1 = sld [smem:[#allocation18_spill]]  ;;  %s224_s12 = scalar_lea.vmem [#allocation5], %s720_s7 }
  0x16   : > { %1394 = sst [smem:[#allocation16_spill]] %s1206_s6  ;;  %s235_s13 = sshll.u32 %s224_s12, 4  ;;  %s236_s13 = int_to_ptr.vmem [resolvable:$true] %s235_s13 }
  0x17   : > { %p1216_p7 = pnand %p845_p5, %p1193_p4  ;;  %s1220_s15 = scalar_lea.sflag [#allocation6], %s220_s28 }
  0x18   : > { %s1118_s16 = smov 128   ;;  %s1119_s17 = smov 8  }
  0x19   : > { %s1226_s25 = sadd.s32 4294967295, %s1116_s23   ;;  %s716_s26 = sadd.s32 4294967294, %s1116_s23  }
  0x1a   : > { %p80_p8 = scmp.ne.s32.totalorder %s1100_s19, %s1096_s18  ;;  %p81_p9 = scmp.eq.s32.totalorder %s1226_s25, 0 }
  0x1b   : > { %s232_s10 = scalar_lea.hbm %s1395_s1, %s797_s30  ;;  %p182_p10 = scmp.eq.s32.totalorder %s1226_s25, 1 }
  0x1c   : > { %s233_s11 = sshll.u32 %s232_s10, 4  ;;  %p188_p11 = scmp.eq.s32.totalorder %s716_s26, 1  ;;  %s234_s11 = int_to_ptr.hbm [resolvable:$true] %s233_s11 }
  0x1d   : > { %833 = dma.hbm_to_vmem [thread:$0]  (!%p1216_p7), %s234_s11, 2048, %s236_s13, %s1220_s15, %s1118_s16, %s1118_s16, %s1119_s17  }
  0x1e   : > { %p717_p12 = scmp.ge.s32.totalorder %s1116_s23, 1  ;;  %p1236_p13 = por %p81_p9, %p80_p8 }
  0x1f   : > { %p1243_p0 = por %p182_p10, %p74_p1  ;;  %p1247_p2 = por %p188_p11, %p80_p8 }
  0x20   : > { %p195_p4 = scmp.lt.s32.totalorder %s1116_s23, 3  ;;  %s1400_s0 = sld [smem:[#allocation17_spill]] }
  0x21   : > { %s1120_s11 = smov [#allocation2]   ;;  %s251_s17 = scalar_lea.hbm %s1385_s2, %s1112_s22 }
  0x22   : > { %p1255_p5 = pnand %p717_p12, %p195_p4  ;;  %s209_s12 = sshll.u32 %s1120_s11, 4  ;;  %s210_s12 = int_to_ptr.vmem [resolvable:$true] %s209_s12 }
  0x23   : > { %s253_s26 = sshll.u32 %s251_s17, 4  ;;  %s248_s7 = scalar_lea.vmem [#allocation7], %s1202_s29  ;;  %s254_s26 = int_to_ptr.hbm [resolvable:$true] %s253_s26 }
  0x24   : > { %p826_p1 = pneg %p1255_p5  ;;  %s255_s8 = sshll.u32 %s248_s7, 4  ;;  %s256_s8 = int_to_ptr.vmem [resolvable:$true] %s255_s8 }
  0x25   : > { %836 = dma.hbm_to_vmem [thread:$0]  (!%p1216_p7), %s254_s26, 16, %s256_s8, %s1220_s15  }
  0x26   : > { %s207_s9 = sshll.u32 %s1400_s0, 4  ;;  %p827_p6 = pnand %p826_p1, %p81_p9  ;;  %s208_s9 = int_to_ptr.hbm [resolvable:$true] %s207_s9 }
  0x27   : > { %s274_s11 = scalar_lea.hbm %s1387_s4, %s1112_s22  ;;  %s271_s24 = scalar_lea.vmem [#allocation8], %s1202_s29 }
  0x28   : > { %829 = dma.hbm_to_vmem [thread:$0]  (!%p827_p6), %s208_s9, 128, %s210_s12, [#allocation3]  }
  0x29   : > { %s278_s6 = sshll.u32 %s271_s24, 4  ;;  %s276_s13 = sshll.u32 %s274_s11, 4  ;;  %s279_s6 = int_to_ptr.vmem [resolvable:$true] %s278_s6  ;;  %s277_s13 = int_to_ptr.hbm [resolvable:$true] %s276_s13 }
  0x2a   : > { %s269_s16 = scalar_lea.sflag [#allocation9], %s1202_s29  ;;  %287 = sbr.rel (%p1255_p5) target bundleno = 317 (0x13d), region = 40 }
  0x2b   : > { %839 = dma.hbm_to_vmem [thread:$0]  (!%p1216_p7), %s277_s13, 16, %s279_s6, %s269_s16  }
  0x2f   : > { %1079 = dma.done.wait (%p81_p9), [#allocation3], 128  }
  0x30   : > { %1081 = vsyncadd (%p81_p9), [#allocation3], 4294967168  ;;  %s294_s0 = sand.u32 1, %s1226_s25   ;;  %s1287_s1 = sand.u32 1, %s1100_s19  }
  0x31   : > { %s726_s24 = sshll.u32 %s1287_s1, 7  ;;  %s295_s29 = scalar_lea.sflag [#allocation6], %s294_s0 }
  0x32   : > { %s1290_s14 = scalar_lea.vmem [#allocation5], %s726_s24 }
  0x33   : > { %1083 = dma.done.wait (%p1236_p13), %s295_s29, 2064  }
  0x34   : > { %1085 = vsyncadd (%p1236_p13), %s295_s29, 4294965232  ;;  %s307_s6 = scalar_lea.vmem [#allocation7], %s1287_s1  ;;  %s314_s15 = scalar_lea.sflag [#allocation9], %s1287_s1 }
  0x35   : > { %s316_s9 = scalar_lea.vmem [#allocation8], %s1287_s1 }
  0x36   : > { %1087 = dma.done.wait (%p1236_p13), %s314_s15, 16  }
  0x37   : > { %1089 = vsyncadd (%p1236_p13), %s314_s15, 4294967280  ;;  %v786_v0 = vld [vmem:[%s1290_s14 + $0x70] sm:$0xf]  ;;  %v813_v1 = vld [vmem:[%s1290_s14 + $0x74] sm:$0xf0]  ;;  %v1121_v53 = vmov 8.0  }
  0x38   : > { %v812_v2 = vld [vmem:[%s1290_s14 + $0x74] sm:$0xf]  ;;  %v787_v3 = vor.u32 %v813_v1, %v786_v0  ;;  %v788_v4 = vld [vmem:[%s1290_s14 + $0x78] sm:$0xf0]  ;;  %v778_v6 = vld [vmem:[%s1290_s14 + $0x60] sm:$0xf]  ;;  %902 = vrcp.f32 %v1121_v53 }
  0x39   : > { %v791_v5 = vor.u32 %v812_v2, %v788_v4  ;;  %v811_v7 = vld [vmem:[%s1290_s14 + $0x64] sm:$0xf0]  ;;  %v810_v8 = vld [vmem:[%s1290_s14 + $0x64] sm:$0xf]  ;;  %v780_v9 = vld [vmem:[%s1290_s14 + $0x68] sm:$0xf0] }
  0x3a   : > { %475 = vmatpush.bf16.xpose.msra.mxu0 %v787_v3  ;;  %v779_v10 = vor.u32 %v811_v7, %v778_v6  ;;  %v783_v11 = vor.u32 %v810_v8, %v780_v9  ;;  %v770_v12 = vld [vmem:[%s1290_s14 + $0x50] sm:$0xf]  ;;  %v809_v13 = vld [vmem:[%s1290_s14 + $0x54] sm:$0xf0]  ;;  %v808_v14 = vld [vmem:[%s1290_s14 + $0x54] sm:$0xf] }
  0x3b   : > { %488 = vmatpush.bf16.xpose.msra.mxu1 %v791_v5  ;;  %v772_v15 = vld [vmem:[%s1290_s14 + $0x58] sm:$0xf0]  ;;  %v771_v16 = vor.u32 %v809_v13, %v770_v12  ;;  %v762_v18 = vld [vmem:[%s1290_s14 + $0x40] sm:$0xf]  ;;  %v807_v19 = vld [vmem:[%s1290_s14 + $0x44] sm:$0xf0] }
  0x3c   : > { %v775_v17 = vor.u32 %v808_v14, %v772_v15  ;;  %v806_v20 = vld [vmem:[%s1290_s14 + $0x44] sm:$0xf]  ;;  %v764_v21 = vld [vmem:[%s1290_s14 + $0x48] sm:$0xf0]  ;;  %v763_v22 = vor.u32 %v807_v19, %v762_v18  ;;  %v754_v24 = vld [vmem:[%s1290_s14 + $0x30] sm:$0xf] }
  0x3d   : > { %v767_v23 = vor.u32 %v806_v20, %v764_v21  ;;  %v805_v25 = vld [vmem:[%s1290_s14 + $0x34] sm:$0xf0]  ;;  %v804_v26 = vld [vmem:[%s1290_s14 + $0x34] sm:$0xf]  ;;  %v756_v27 = vld [vmem:[%s1290_s14 + $0x38] sm:$0xf0] }
  0x3e   : > { %v755_v28 = vor.u32 %v805_v25, %v754_v24  ;;  %v759_v29 = vor.u32 %v804_v26, %v756_v27  ;;  %v746_v30 = vld [vmem:[%s1290_s14 + $0x20] sm:$0xf]  ;;  %v803_v31 = vld [vmem:[%s1290_s14 + $0x24] sm:$0xf0]  ;;  %v802_v32 = vld [vmem:[%s1290_s14 + $0x24] sm:$0xf]  ;;  %v903_v54 = vpop.eup %902 }
  0x3f   : > { %v748_v33 = vld [vmem:[%s1290_s14 + $0x28] sm:$0xf0]  ;;  %v747_v34 = vor.u32 %v803_v31, %v746_v30  ;;  %v738_v36 = vld [vmem:[%s1290_s14 + $0x10] sm:$0xf]  ;;  %v801_v37 = vld [vmem:[%s1290_s14 + $0x14] sm:$0xf0]  ;;  %vm523_vm0 = vweird.f32 %v903_v54 }
  0x40   : > { %v751_v35 = vor.u32 %v802_v32, %v748_v33  ;;  %v800_v38 = vld [vmem:[%s1290_s14 + $0x14] sm:$0xf]  ;;  %v740_v39 = vld [vmem:[%s1290_s14 + $0x18] sm:$0xf0]  ;;  %v739_v40 = vor.u32 %v801_v37, %v738_v36  ;;  %v730_v42 = vld [vmem:[%s1290_s14] sm:$0xf] }
  0x41   : > { %v743_v41 = vor.u32 %v800_v38, %v740_v39  ;;  %v799_v43 = vld [vmem:[%s1290_s14 + $0x4] sm:$0xf0]  ;;  %v798_v44 = vld [vmem:[%s1290_s14 + $0x4] sm:$0xf]  ;;  %v732_v45 = vld [vmem:[%s1290_s14 + $0x8] sm:$0xf0] }
  0x42   : > { %476 = vmatpush.bf16.xpose.msra.mxu0 %v779_v10  ;;  %v731_v46 = vor.u32 %v799_v43, %v730_v42  ;;  %v370_v47 = vld [vmem:[#allocation2] sm:$0xff]  ;;  %v735_v48 = vor.u32 %v798_v44, %v732_v45  ;;  %v519_v57 = vmul.f32 8.0, %v903_v54  ;;  %p357_p7 = scmp.lt.s32.totalorder %s1108_s21, 1  ;;  %s727_s17 = sshll.u32 %s1287_s1, 3 }
  0x43   : > { %489 = vmatpush.bf16.xpose.msra.mxu1 %v783_v11  ;;  %v389_v49 = vunpack.c.l.b16 %v370_v47  ;;  %v390_v50 = vunpack.c.h.b16 %v370_v47  ;;  %v901_v59 = vld [vmem:[%s307_s6] ss:$0 sm:$0xff]  ;;  %s793_s26 = sshll.u32 %s1108_s21, 3  ;;  %s354_s13 = scalar_lea.vmem [#allocation10], %s727_s17 }
  0x44   : > { %v520_v60 = vsub.f32 1.0, %v519_v57  ;;  %s358_s25 = scalar_select %p357_p7, %s1108_s21, 1 }
  0x45   : > { %v391_v51 = vpack.c.b16 %v389_v49, %v389_v49  ;;  %v392_v52 = vpack.c.b16 %v390_v50, %v390_v50  ;;  %s571_s11 = scalar_lea.hbm %s1388_s5, %s793_s26  ;;  %s573_s16 = sshll.u32 %s354_s13, 4  ;;  %s574_s16 = int_to_ptr.vmem [resolvable:$true] %s573_s16 }
  0x46   : > { %v521_v1 = vmul.f32 %v903_v54, %v520_v60  ;;  %s359_s12 = scalar_lea.vmem %s1386_s3, %s358_s25  ;;  %s575_s0 = sshll.u32 %s571_s11, 4  ;;  %s576_s0 = int_to_ptr.hbm [resolvable:$true] %s575_s0 }
  0x47   : > { %v546_v26 = vld [vmem:[%s359_s12] sm:$0x1]  ;;  %s561_s21 = scalar_lea.sflag [#allocation4], %s1287_s1  ;;  %s1040_s24 = sshra.s32 %s576_s0, 4  ;;  %s1041_s24 = int_to_ptr.hbm [resolvable:$true] %s1040_s24 }
  0x48   : > { %v522_v4 = vadd.f32 %v903_v54, %v521_v1  ;;  %s1042_s29 = scalar_lea.hbm %s1041_s24, 8  ;;  %s1046_s15 = scalar_lea.hbm %s1388_s5, 16 }
  0x49   : > { %p1043_p8 = scmp.ne.s32.totalorder %s1041_s24, %s1042_s29  ;;  %p1047_p11 = scmp.lt.s32.totalorder %s1041_s24, %s1388_s5 }
  0x4a   : > { %477 = vmatpush.bf16.xpose.msra.mxu0 %v771_v16  ;;  %v524_v7 = vsel %vm523_vm0, %v903_v54, %v522_v4  ;;  %p1048_p12 = scmp.lt.s32.totalorder %s1046_s15, %s1042_s29 }
  0x4b   : > { %490 = vmatpush.bf16.xpose.msra.mxu1 %v775_v17  ;;  %p1044_p9 = pnand %p1043_p8, %p1243_p0 }
  0x4c   : > { %p1049_p13 = por %p1048_p12, %p1047_p11 }
  0x4d   : > { %p1045_p10 = pneg %p1044_p9 }
  0x4f   : > { %p1050_p4 = pnand %p1049_p13, %p1045_p10 }
  0x52   : > { %478 = vmatpush.bf16.xpose.msra.mxu0 %v763_v22 }
  0x53   : > { %491 = vmatpush.bf16.xpose.msra.mxu1 %v767_v23 }
  0x5a   : > { %479 = vmatpush.bf16.xpose.msra.mxu0 %v755_v28 }
  0x5b   : > { %492 = vmatpush.bf16.xpose.msra.mxu1 %v759_v29  ;;  %v548_v29 = vld [vmem:[%s316_s9] sm:$0x1] }
  0x62   : > { %480 = vmatpush.bf16.xpose.msra.mxu0 %v747_v34 }
  0x63   : > { %493 = vmatpush.bf16.xpose.msra.mxu1 %v751_v35 }
  0x6a   : > { %481 = vmatpush.bf16.xpose.msra.mxu0 %v739_v40 }
  0x6b   : > { %494 = vmatpush.bf16.xpose.msra.mxu1 %v743_v41 }
  0x72   : > { %482 = vmatpush.bf16.xpose.msra.mxu0 %v731_v46 }
  0x73   : > { %495 = vmatpush.bf16.xpose.msra.mxu1 %v735_v48 }
  0x79   : > { %483 = vmatmul.bf16.vlgmr.msra.gmra.mxu0 %v391_v51 }
  0x7a   : > { %496 = vmatmul.bf16.vlgmr.msra.gmra.mxu1 %v392_v52 }
  0xf6   : > { %v484_v55 = vpop.f32.mrf.mxu0 }
  0xf7   : > { %v497_v56 = vpop.f32.mrf.mxu1 }
  0xf8   : > { %v498_v58 = vadd.f32 %v497_v56, %v484_v55 }
  0xfa   : > { %v511_v61 = vadd.f32 %v901_v59, %v498_v58 }
  0xfc   : > { %v512_v63 = vrot.slane %v511_v61, 4 }
  0xfe   : > { %v486_v62 = vpop.f32.mrf.mxu0  ;;  %v513_v2 = vadd.f32 %v512_v63, %v511_v61 }
  0xff   : > { %v499_v0 = vpop.f32.mrf.mxu1 }
 0x100   : > { %v514_v3 = vrot.slane %v513_v2, 2 }
 0x102   : > { %v515_v5 = vadd.f32 %v514_v3, %v513_v2 }
 0x104   : > { %v516_v6 = vrot.slane %v515_v5, 1 }
 0x106   : > { %v517_v8 = vadd.f32 %v516_v6, %v515_v5 }
 0x108   : > { %v525_v9 = vmul.f32 %v524_v7, %v517_v8 }
 0x10a   : > { %v526_v10 = vsub.f32 %v511_v61, %v525_v9 }
 0x10c   : > { %v527_v11 = vmul.f32 %v526_v10, %v526_v10 }
 0x10e   : > { %v528_v12 = vrot.slane %v527_v11, 4 }
 0x110   : > { %v529_v13 = vadd.f32 %v528_v12, %v527_v11 }
 0x112   : > { %v530_v14 = vrot.slane %v529_v13, 2 }
 0x114   : > { %v531_v15 = vadd.f32 %v530_v14, %v529_v13 }
 0x116   : > { %v532_v16 = vrot.slane %v531_v15, 1 }
 0x118   : > { %v533_v17 = vadd.f32 %v532_v16, %v531_v15 }
 0x11a   : > { %v534_v18 = vmul.f32 %v533_v17, %v524_v7 }
 0x11c   : > { %v535_v19 = vadd.f32 1e-05, %v534_v18 }
 0x11e   : > { %904 = vrsqrt.f32 %v535_v19  ;;  %vm542_vm2 = vweird.f32 %v535_v19 }
 0x124   : > { %v905_v20 = vpop.eup %904 }
 0x125   : > { %v537_v21 = vmul.f32 %v905_v20, %v535_v19  ;;  %vm543_vm1 = vweird.f32 %v905_v20 }
 0x126   : > { %vm544_vm3 = vmor %vm542_vm2, %vm543_vm1 }
 0x127   : > { %v538_v22 = vmul.f32 %v905_v20, %v537_v21 }
 0x129   : > { %v539_v23 = vmul.f32 0.5, %v538_v22 }
 0x12b   : > { %v540_v24 = vsub.f32 1.5, %v539_v23 }
 0x12d   : > { %v541_v25 = vmul.f32 %v905_v20, %v540_v24 }
 0x12f   : > { %v545_v27 = vsel %vm544_vm3, %v905_v20, %v541_v25 }
 0x130   : > { %v547_v28 = vmul.f32 %v546_v26, %v545_v27 }
 0x132   : > { %v549_v30 = vmul.f32 %v547_v28, %v525_v9  ;;  %v552_v31 = vperm.slane %v547_v28, 0 }
 0x134   : > { %v550_v32 = vsub.f32 %v548_v29, %v549_v30  ;;  %v554_v33 = vmul.f32 %v552_v31, %v511_v61 }
 0x136   : > { %v556_v34 = vperm.slane %v550_v32, 0 }
 0x138   : > { %v558_v35 = vadd.f32 %v556_v34, %v554_v33 }
 0x13a   : > { %559 = vst [vmem:[%s354_s13] sm:$0xff] %v558_v35 }
 0x13b   : > { %1053 = shalt.err (!%p1050_p4)
}
 0x13c   : > { %824 = dma.vmem_to_hbm [thread:$0]  (%p1243_p0), %s574_s16, 128, %s576_s0, %s561_s21  }
 0x13d PF: > { %s587_s1 = sand.u32 1, %s1096_s18   ;;  %p841_p5 = pnand %p719_p3, %p1247_p2 }
 0x13e   : > { %s588_s27 = scalar_lea.sflag [#allocation4], %s587_s1 }
 0x13f   : > { %p842_p1 = pneg %p841_p5 }
 0x141   : > { %1091 = dma.done.wait (%p842_p1), %s588_s27, 128  }
 0x142   : > { %1093 = vsyncadd (%p842_p1), %s588_s27, 4294967168  ;;  %s25_s23 = sadd.s32 1, %s1116_s23   ;;  %s1402_s10 = sld [smem:[#allocation16_spill]] }
 0x143   : > { %p22_p6 = scmp.ge.s32.totalorder %s25_s23, 4   ;;  %s1403_s28 = sld [smem:[#allocation15_spill]] }
 0x144   : > { %s1404_s18 = smov %s1100_s19  ;;  %s1405_s19 = smov %s1104_s20 }
 0x145   : > { %s1407_s21 = smov %s1112_s22  ;;  %24 = sbr.rel (!%p22_p6) target bundleno = 12 (0xc), region = 126 }
 0x148   : > { %s1406_s20 = smov %s1402_s10 }
 0x149   : > { %s1408_s22 = smov %s1403_s28 }
 0x14a   :  { %594 = vsyncpa [#allocation3], 1 }
 0x14b   :  { %596 = vsyncpa [#allocation3 + $0x1], 1 }
 0x14c   :  { %597 = vsyncpa [#allocation6], 1 }
 0x14d   :  { %599 = vsyncpa [#allocation6 + $0x1], 1 }
 0x14e   :  { %600 = vsyncpa [#allocation9], 1 }
 0x14f   :  { %602 = vsyncpa [#allocation9 + $0x1], 1 }
 0x150   :  { %603 = vsyncpa [#allocation4], 1 }
 0x151   :  { %605 = vsyncpa [#allocation4 + $0x1], 1 }

</bundles_post_ra>
